<compile_context>
chip_gen: v6e
topology: v6e:2x2x1
jax: 0.10.0
libtpu: 0.0.40
codegen_flags: <defaults>
</compile_context>

<pallas_src>
import math

import jax
import jax.numpy as jnp
from jax.experimental import pallas as pl
from jax.experimental.pallas import tpu as pltpu


def _round_up(x, m):
    return (x + m - 1) // m * m


def _fixed_embed_kernel(idx_ref, tbl_ref, o_ref):
    # idx_ref: (TN, 1) int32   tbl_ref: (c_in, Dp) f32   o_ref: (TN, Dp) f32
    idx = idx_ref[...]                                            # (TN, 1)
    tn = idx_ref.shape[0]
    c_in = tbl_ref.shape[0]
    # One-hot rows (TN, c_in): lane j is 1.0 where j == idx[row].
    lane = jax.lax.broadcasted_iota(jnp.int32, (tn, c_in), 1)
    onehot = (lane == idx).astype(jnp.float32)                    # (TN, c_in)
    # Single fused MXU matmul performs the gather: (TN, c_in) @ (c_in, Dp).
    o_ref[...] = jnp.dot(onehot, tbl_ref[...],
                         preferred_element_type=jnp.float32).astype(o_ref.dtype)


def fixed_embedding_forward(x, table, *, max_rows_per_tile=512):
    """Embedding lookup y = table[x] via Pallas.

    x:     integer indices of any shape, values in [0, c_in)
    table: (c_in, d_model) float32 fixed sinusoidal table
    returns x.shape + (d_model,) float32
    """
    c_in, d_model = table.shape
    orig_shape = x.shape

    n = 1
    for s in orig_shape:
        n *= int(s)

    # Lane-dense output: pad d_model up to a multiple of 128 (sliced off below).
    d_pad = _round_up(d_model, 128)
    tbl = table.astype(jnp.float32)
    if d_pad != d_model:
        tbl = jnp.pad(tbl, ((0, 0), (0, d_pad - d_model)))

    # Many rows per grid step; pad the flattened row count.
    if n >= max_rows_per_tile:
        tn = max_rows_per_tile
    else:
        tn = _round_up(max(n, 8), 8)
    n_pad = _round_up(n, tn)

    idx = x.reshape(-1).astype(jnp.int32)
    if n_pad != n:
        idx = jnp.pad(idx, (0, n_pad - n))       # pad rows use (valid) index 0
    idx2d = idx.reshape(n_pad, 1)

    grid = (n_pad // tn,)

    out = pl.pallas_call(
        _fixed_embed_kernel,
        out_shape=jax.ShapeDtypeStruct((n_pad, d_pad), jnp.float32),
        grid_spec=pltpu.PrefetchScalarGridSpec(
            num_scalar_prefetch=0,
            grid=grid,
            in_specs=[
                pl.BlockSpec((tn, 1), lambda i: (i, 0)),        # row indices
                pl.BlockSpec((c_in, d_pad), lambda i: (0, 0)),  # resident table
            ],
            out_specs=pl.BlockSpec((tn, d_pad), lambda i: (i, 0)),
        ),
        compiler_params=pltpu.CompilerParams(
            dimension_semantics=("parallel",),
        ),
    )(idx2d, tbl)

    out = out[:n, :d_model]
    # .detach() in the PyTorch forward is a no-op here (forward-only, no grads).
    return out.reshape(*orig_shape, d_model)


def make_fixed_embedding_table(c_in, d_model):
    """Build the fixed sinusoidal table exactly as the PyTorch module does."""
    position = jnp.arange(c_in, dtype=jnp.float32)[:, None]                 # (c_in, 1)
    div_term = jnp.exp(jnp.arange(0, d_model, 2, dtype=jnp.float32)
                       * -(math.log(10000.0) / d_model))                    # (d_model//2,)
    w = jnp.zeros((c_in, d_model), dtype=jnp.float32)
    w = w.at[:, 0::2].set(jnp.sin(position * div_term))
    w = w.at[:, 1::2].set(jnp.cos(position * div_term))
    return w


def _reference_forward(x, table):
    """Pure-JAX reference: plain embedding lookup."""
    return jnp.take(table, x, axis=0)


if __name__ == "__main__":
    key = jax.random.PRNGKey(0)

    # Small shapes consistent with the module: batch=2, seq=8,
    # c_in=24 (vocab, e.g. hour-of-day), d_model=32.
    B, L, c_in, d_model = 2, 8, 24, 32

    x = jax.random.randint(key, (B, L), 0, c_in, dtype=jnp.int32)
    table = make_fixed_embedding_table(c_in, d_model)

    out = fixed_embedding_forward(x, table)
    out = jax.block_until_ready(out)

    ref = _reference_forward(x, table)
    assert out.shape == (B, L, d_model)
    assert jnp.allclose(out, ref, atol=1e-5, rtol=1e-5), "mismatch vs reference"

    print("KERNEL_OK")
</pallas_src>

<mosaic_0001>
module attributes {stable_mosaic.version = 11 : i64} {
  func.func @_fixed_embed_kernel(%arg0: i32, %arg1: memref<16x1xi32, #tpu.memory_space<vmem>>, %arg2: memref<24x128xf32, #tpu.memory_space<vmem>>, %arg3: memref<16x128xf32, #tpu.memory_space<vmem>>) attributes {dimension_semantics = [#tpu.dimension_semantics<parallel>], iteration_bounds = array<i64: 1>, scalar_prefetch = 0 : i64, scratch_operands = 0 : i64, tpu.core_type = #tpu.core_type<tc>, window_params = [{transform_indices = @transform_0, window_bounds = array<i64: 16, 1>}, {pipeline_mode = #tpu.pipeline_mode<synchronous>, transform_indices = @transform_1, window_bounds = array<i64: 24, 128>}, {transform_indices = @transform_2, window_bounds = array<i64: 16, 128>}]} {
    %c0 = arith.constant 0 : index
    %c0_0 = arith.constant 0 : index
    %0 = vector.load %arg1[%c0, %c0_0] : memref<16x1xi32, #tpu.memory_space<vmem>>, vector<16x1xi32>
    %1 = tpu.iota {dimensions = array<i32: 1>} : vector<16x24xi32>
    %2 = vector.broadcast %0 : vector<16x1xi32> to vector<16x24xi32>
    %3 = arith.cmpi eq, %1, %2 : vector<16x24xi32>
    %4 = arith.extui %3 : vector<16x24xi1> to vector<16x24xi32>
    %5 = arith.sitofp %4 : vector<16x24xi32> to vector<16x24xf32>
    %c0_1 = arith.constant 0 : index
    %c0_2 = arith.constant 0 : index
    %6 = vector.load %arg2[%c0_1, %c0_2] : memref<24x128xf32, #tpu.memory_space<vmem>>, vector<24x128xf32>
    %cst = arith.constant dense<0.000000e+00> : vector<16x128xf32>
    %7 = tpu.matmul %5, %6, %cst {dimension_numbers = #tpu.dot_dimension_numbers<[1], [0], [0], [1], [0, 0, 1, 1], [], []>} : vector<16x24xf32>, vector<24x128xf32>, vector<16x128xf32> -> vector<16x128xf32>
    %c0_3 = arith.constant 0 : index
    %c0_4 = arith.constant 0 : index
    %8 = vector.load %arg3[%c0_3, %c0_4] : memref<16x128xf32, #tpu.memory_space<vmem>>, vector<16x128xf32>
    tpu.vector_store %arg3[%c0_3, %c0_4], %7 {strides = array<i32>} : memref<16x128xf32, #tpu.memory_space<vmem>>, vector<16x128xf32>,
    return
  }
  func.func @transform_0(%arg0: i32) -> (i32, i32) {
    %c0_i32 = arith.constant 0 : i32
    %c0_i32_0 = arith.constant 0 : i32
    return %arg0, %c0_i32 : i32, i32
  }
  func.func @transform_1(%arg0: i32) -> (i32, i32) {
    %c0_i32 = arith.constant 0 : i32
    %c0_i32_0 = arith.constant 0 : i32
    %c0_i32_1 = arith.constant 0 : i32
    return %c0_i32, %c0_i32_0 : i32, i32
  }
  func.func @transform_2(%arg0: i32) -> (i32, i32) {
    %c0_i32 = arith.constant 0 : i32
    %c0_i32_0 = arith.constant 0 : i32
    return %arg0, %c0_i32 : i32, i32
  }
}

</mosaic_0001>

<bundles_post_ra>
// kernel: tpu_custom_call.1
= control target key start
LH: loop header
LB: loop body
LE: loop exit
PB: predicated region body
PF: predicated region fallthrough
CT: control target
= control target key end

     0   :  { %7 = vsyncpa [#allocation3], 0  ;;  %s254_s0 = inlined_call_operand.vmem [shape: s32[16,1], index: 0, kind: input, shape index: {}]   ;;  %s255_s1 = inlined_call_operand.hbm [shape: f32[24,128], index: 1, kind: input, shape index: {}]   ;;  %s256_s2 = inlined_call_operand.hbm [shape: f32[16,128], index: 2, kind: output, shape index: {}]  }
   0x1   :  { %8 = vsyncpa [#allocation4], 0  ;;  %s215_s9 = smov [#allocation2]  }
   0x2   :  { %s16_s10 = sshll.u32 %s215_s9, 4  ;;  %s17_s10 = int_to_ptr.vmem [resolvable:$true] %s16_s10 }
   0x3   :  { %s179_s11 = scalar_lea.vmem %s17_s10, 384  ;;  %p184_p1 = scmp.lt.s32.totalorder %s17_s10, %s17_s10 }
   0x4   :  { %p180_p0 = scmp.ne.s32.totalorder %s17_s10, %s179_s11  ;;  %p185_p2 = scmp.lt.s32.totalorder %s179_s11, %s179_s11 }
   0x6   :  { %p186_p3 = por %p185_p2, %p184_p1 }
   0x8   :  { %p187_p4 = pnand %p186_p3, %p180_p0 }
   0xa   :  { %190 = shalt.err (!%p187_p4)
}
   0xb   :  { %s216_s12 = smov 128   ;;  %s217_s13 = smov 8  }
   0xc   :  { %22 = dma.hbm_to_vmem [thread:$0]  %s255_s1, 384, %s17_s10, [#allocation3], %s216_s12, %s216_s12, %s217_s13  }
   0xd   :  { %211 = dma.done.wait [#allocation3], 384  }
   0xe   :  { %212 = vsyncadd [#allocation3], 4294966912  ;;  %v218_v0 = vmov 0   ;;  %v26_v1 = vld [vmem:[%s254_s0] sm:$0xff]  ;;  %v44_v2 = vld [vmem:[#allocation2 + $0x10] sm:$0xff]  ;;  %v28_v6 = vlaneseq  ;;  %vm45_vm0 = vcmask 195584  }
   0xf   :  { %170 = vset.pattern.permute.xlu0 %v218_v0  ;;  %155 = vmatprep.subr.mxu0 %v44_v2  ;;  %v43_v3 = vld [vmem:[#allocation2 + $0x8] sm:$0xff]  ;;  %v42_v5 = vld [vmem:[#allocation2] sm:$0xff]  ;;  %v219_v9 = vmov 0.0  }
  0x10   :  { %31 = vperm.xlu0 %170, %v26_v1   ;;  %v27_v4 = vld [vmem:[%s254_s0 + $0x8] sm:$0xff]  ;;  %156 = vmatpush3.msra.mxu0 %v44_v2  ;;  %v29_v7 = vand.u32 127, %v28_v6  ;;  %s220_s0 = smov [#allocation5]  }
  0x11   :  { %157 = vmatprep.subr.mxu0 %v43_v3  ;;  %s134_s1 = sshll.u32 %s220_s0, 4  ;;  %s135_s1 = int_to_ptr.vmem [resolvable:$true] %s134_s1 }
  0x12   :  { %158 = vmatpush3.msra.mxu0 %v43_v3  ;;  %s191_s20 = scalar_lea.vmem %s135_s1, 256  ;;  %p196_p6 = scmp.lt.s32.totalorder %s135_s1, %s135_s1 }
  0x13   :  { %159 = vmatprep.subr.mxu0 %v42_v5  ;;  %p192_p5 = scmp.ne.s32.totalorder %s135_s1, %s191_s20  ;;  %p197_p7 = scmp.lt.s32.totalorder %s191_s20, %s191_s20 }
  0x14   :  { %34 = vperm.xlu0 %170, %v27_v4   ;;  %160 = vmatpush3.msra.mxu0 %v42_v5 }
  0x15   :  { %p198_p8 = por %p197_p7, %p196_p6 }
  0x17   :  { %p199_p9 = pnand %p198_p8, %p192_p5 }
  0x8b   :  { %v32_v8 = vpop.permute.xlu0 %31 }
  0x8c   :  { %vm36_vm1 = vcmp.eq.s32.totalorder %v29_v7, %v32_v8 }
  0x8d   :  { %v146_v10 = vsel %vm36_vm1, 1.0, %v219_v9 }
  0x8e   :  { %161 = vmatprep.mubr.msk.f32.mxu0 %vm45_vm0, %v146_v10 }
  0x8f   :  { %v35_v11 = vpop.permute.xlu0 %34 }
  0x90   :  { %vm37_vm2 = vcmp.eq.s32.totalorder %v29_v7, %v35_v11 }
  0x91   :  { %v147_v12 = vsel %vm37_vm2, 1.0, %v219_v9 }
  0x92   :  { %162 = vmatmul.mubr.msk.f32.vlgmr.msra.gmra.mxu0 %vm45_vm0, %v147_v12 }
 0x152   :  { %v163_v13 = vpop.f32.mrf.mxu0 }
 0x153   :  { %128 = vst [vmem:[#allocation5 + $0x8] sm:$0xff] %v163_v13 }
 0x154   :  { %v118_v14 = vpop.f32.mrf.mxu0 }
 0x155   :  { %127 = vst [vmem:[#allocation5] sm:$0xff] %v118_v14 }
 0x156   :  { %202 = shalt.err (!%p199_p9)
}
 0x157   :  { %140 = dma.vmem_to_hbm [thread:$0]  %s135_s1, 256, %s256_s2, [#allocation4], %s216_s12, %s216_s12, %s217_s13  }
 0x158   :  { %213 = dma.done.wait [#allocation4], 256  }
 0x159   :  { %214 = vsyncadd [#allocation4], 4294967040 }
 0x15a   :  { %144 = vsyncpa [#allocation3], 1 }
 0x15b   :  { %145 = vsyncpa [#allocation4], 1 }

</bundles_post_ra>
